<compile_context>
chip_gen: v6e
topology: v6e:2x2x1
jax: 0.10.0
libtpu: 0.0.40
codegen_flags: <defaults>
</compile_context>

<pallas_src>
import functools

import jax
import jax.numpy as jnp
from jax import lax
from jax.experimental import pallas as pl
from jax.experimental.pallas import tpu as pltpu

_VMEM_LIMIT = 48 * 1024 * 1024  # safe on v5e/v6e (128 MiB) and v7x (64 MiB) physical VMEM


def _pick_row_tile(n_tokens, n_embed):
    """Largest row tile (up to 1024) whose double-buffered x tile fits the VMEM budget."""
    budget = _VMEM_LIMIT // 4  # headroom for weights / intermediates / outputs
    for t in (1024, 512, 256, 128, 64, 32, 16, 8):
        if t <= max(n_tokens, 8) and 2 * t * n_embed * 4 <= budget:
            return t
    return 8


# ----------------------------------------------------------------------------- router kernel
def _router_kernel(x_ref, w_ref, b_ref, noise_ref, gate_ref, idx_ref, *,
                   top_k, num_experts):
    x = x_ref[...]                                                      # (tm, E) f32

    # Fused [route | noise] matmul: one MXU pass over the x tile.
    h = jnp.dot(x, w_ref[...], preferred_element_type=jnp.float32) + b_ref[...]   # (tm, 2X)
    logits = h[:, :num_experts]                                         # (tm, X)
    noise_logits = h[:, num_experts:]                                   # (tm, X)

    # noise = randn * softplus(noise_logits); noisy = logits + noise
    softplus = jnp.logaddexp(jnp.float32(0.0), noise_logits)
    noisy = logits + noise_ref[...] * softplus                          # (tm, X)

    col_ids = lax.broadcasted_iota(jnp.int32, noisy.shape, 1)           # (tm, X)
    k_ids = lax.broadcasted_iota(jnp.int32, (noisy.shape[0], top_k), 1)  # (tm, K)

    # Iterative top-k: k passes of (max -> first-occurrence argmax -> mask).
    work = noisy
    sparse = jnp.full_like(noisy, -jnp.inf)
    idx = jnp.zeros((noisy.shape[0], top_k), jnp.int32)
    for k in range(top_k):
        m = jnp.max(work, axis=-1, keepdims=True)                       # (tm, 1)
        amax = jnp.min(jnp.where(work == m, col_ids, num_experts),
                       axis=-1, keepdims=True)                          # (tm, 1) int32
        onehot = col_ids == amax
        sparse = jnp.where(onehot, noisy, sparse)
        work = jnp.where(onehot, -jnp.inf, work)
        idx = jnp.where(k_ids == k, amax, idx)                          # no concat / shuffle

    # softmax over sparse logits (-inf everywhere except the top-k slots).
    mx = jnp.max(sparse, axis=-1, keepdims=True)
    e = jnp.exp(sparse - mx)
    denom = jnp.sum(e, axis=-1, keepdims=True)
    gate_ref[...] = e * pl.reciprocal(denom, approx=False)
    idx_ref[...] = idx


def noisy_topk_router(x2, w_route, b_route, w_noise, b_noise, noise2, top_k, row_tile):
    """x2: (Np, E) padded tokens; returns gating (Np, X) and indices (Np, top_k)."""
    Np, E = x2.shape
    X = w_route.shape[1]

    wcat = jnp.concatenate([w_route, w_noise], axis=1).astype(jnp.float32)       # (E, 2X)
    bcat = jnp.concatenate([b_route, b_noise], axis=0).reshape(1, 2 * X).astype(jnp.float32)

    kernel = functools.partial(_router_kernel, top_k=top_k, num_experts=X)
    cost = pl.CostEstimate(
        flops=2 * Np * E * 2 * X,
        transcendentals=3 * Np * X,
        bytes_accessed=4 * (Np * E + E * 2 * X + 2 * X + 2 * Np * X + Np * top_k))

    gating, idx = pl.pallas_call(
        kernel,
        out_shape=(jax.ShapeDtypeStruct((Np, X), jnp.float32),
                   jax.ShapeDtypeStruct((Np, top_k), jnp.int32)),
        grid=(Np // row_tile,),
        in_specs=[
            pl.BlockSpec((row_tile, E), lambda i: (i, 0)),   # x tokens
            pl.BlockSpec((E, 2 * X), lambda i: (0, 0)),      # fused [route|noise] weight
            pl.BlockSpec((1, 2 * X), lambda i: (0, 0)),      # fused bias
            pl.BlockSpec((row_tile, X), lambda i: (i, 0)),   # gaussian noise
        ],
        out_specs=(
            pl.BlockSpec((row_tile, X), lambda i: (i, 0)),
            pl.BlockSpec((row_tile, top_k), lambda i: (i, 0)),
        ),
        compiler_params=pltpu.CompilerParams(
            dimension_semantics=("parallel",),
            vmem_limit_bytes=_VMEM_LIMIT),
        cost_estimate=cost,
    )(x2, wcat, bcat, noise2)
    return gating, idx


# -------------------------------------------------------------------------- expert MoE kernel
def _moe_expert_kernel(x_ref, wgt_ref, w1_ref, b1_ref, w2_ref, b2_ref, out_ref, acc_ref):
    e = pl.program_id(1)

    @pl.when(e == 0)
    def _():
        acc_ref[...] = jnp.zeros_like(acc_ref)

    x = x_ref[...]                                                       # (tm, E)
    h = jnp.dot(x, w1_ref[0], preferred_element_type=jnp.float32) + b1_ref[0]
    h = jnp.maximum(h, 0.0)                                              # ReLU
    y = jnp.dot(h, w2_ref[0], preferred_element_type=jnp.float32) + b2_ref[0]   # (tm, E)

    # Per-token gate for this expert: select column e of the (tm, X) weight table.
    col_ids = lax.broadcasted_iota(jnp.int32, wgt_ref.shape, 1)
    gate = jnp.sum(jnp.where(col_ids == e, wgt_ref[...], 0.0),
                   axis=-1, keepdims=True)                               # (tm, 1)
    acc_ref[...] += y * gate

    @pl.when(e == pl.num_programs(1) - 1)
    def _():
        out_ref[...] = acc_ref[...].astype(out_ref.dtype)


def moe_expert_dispatch(x2, wgt2, w1, b1, w2, b2, row_tile):
    """x2: (Np, E), wgt2: (Np, X) capacity-masked gate weights, expert params stacked on X."""
    Np, E = x2.shape
    X, _, H = w1.shape

    cost = pl.CostEstimate(
        flops=4 * X * Np * E * H,
        transcendentals=0,
        bytes_accessed=4 * (X * Np * (E + X) + X * (E * H + H + H * E + E) + Np * E))

    out = pl.pallas_call(
        _moe_expert_kernel,
        out_shape=jax.ShapeDtypeStruct((Np, E), jnp.float32),
        grid=(Np // row_tile, X),
        in_specs=[
            pl.BlockSpec((row_tile, E), lambda i, e: (i, 0)),   # x tokens
            pl.BlockSpec((row_tile, X), lambda i, e: (i, 0)),   # gate*keep weights
            pl.BlockSpec((1, E, H), lambda i, e: (e, 0, 0)),    # expert w1
            pl.BlockSpec((1, 1, H), lambda i, e: (e, 0, 0)),    # expert b1
            pl.BlockSpec((1, H, E), lambda i, e: (e, 0, 0)),    # expert w2
            pl.BlockSpec((1, 1, E), lambda i, e: (e, 0, 0)),    # expert b2
        ],
        out_specs=pl.BlockSpec((row_tile, E), lambda i, e: (i, 0)),
        scratch_shapes=[pltpu.VMEM((row_tile, E), jnp.float32)],
        compiler_params=pltpu.CompilerParams(
            dimension_semantics=("parallel", "arbitrary"),
            vmem_limit_bytes=_VMEM_LIMIT),
        cost_estimate=cost,
    )(x2, wgt2, w1, b1, w2, b2)
    return out


# ----------------------------------------------------------------------------- full forward
def sparse_moe_forward(x, w_route, b_route, w_noise, b_noise,
                       w1, b1, w2, b2, noise, top_k, capacity_factor=1.0):
    B, T, E = x.shape
    X = w_route.shape[1]
    N = B * T

    row_tile = _pick_row_tile(N, E)
    Np = ((N + row_tile - 1) // row_tile) * row_tile

    x2 = x.reshape(N, E).astype(jnp.float32)
    noise2 = noise.reshape(N, X).astype(jnp.float32)
    if Np != N:
        x2 = jnp.pad(x2, ((0, Np - N), (0, 0)))
        noise2 = jnp.pad(noise2, ((0, Np - N), (0, 0)))

    gating_p, idx_p = noisy_topk_router(
        x2, w_route, b_route, w_noise, b_noise, noise2, top_k, row_tile)
    gating = gating_p[:N]                                               # (N, X)
    idx = idx_p[:N]                                                     # (N, top_k)

    # TODO(synk): the capacity cutoff (a global cumulative count over flat token order) is
    # computed in plain JAX on the tiny (N, X) routing table and folded into the gate weights.
    expert_capacity = int(N * top_k / X * capacity_factor)
    sel = jnp.any(idx[:, :, None] == jnp.arange(X)[None, None, :], axis=1)      # (N, X) bool
    rank = jnp.cumsum(sel.astype(jnp.int32), axis=0)                            # 1-based rank
    keep = sel & (rank <= expert_capacity)
    wgt = jnp.where(keep, gating, 0.0).astype(jnp.float32)                      # (N, X)
    wgt2 = jnp.pad(wgt, ((0, Np - N), (0, 0))) if Np != N else wgt

    out_p = moe_expert_dispatch(
        x2, wgt2,
        w1.astype(jnp.float32), b1.astype(jnp.float32),
        w2.astype(jnp.float32), b2.astype(jnp.float32),
        row_tile)
    final = out_p[:N].reshape(B, T, E)
    return final, gating.reshape(B, T, X), idx.reshape(B, T, top_k)


# --------------------------------------------------------------------------------- reference
def _reference_sparse_moe(x, w_route, b_route, w_noise, b_noise,
                          w1, b1, w2, b2, noise, top_k, capacity_factor=1.0):
    B, T, E = x.shape
    X = w_route.shape[1]
    N = B * T

    logits = x @ w_route + b_route
    noise_logits = x @ w_noise + b_noise
    noisy = logits + noise * jax.nn.softplus(noise_logits)
    _, top_idx = lax.top_k(noisy, top_k)
    mask = jnp.any(top_idx[..., :, None] == jnp.arange(X), axis=-2)
    sparse = jnp.where(mask, noisy, -jnp.inf)
    gating = jax.nn.softmax(sparse, axis=-1)

    flat_x = x.reshape(N, E)
    flat_g = gating.reshape(N, X)
    flat_idx = top_idx.reshape(N, top_k)
    capacity = int(N * top_k / X * capacity_factor)

    updates = jnp.zeros((N, E), jnp.float32)
    for i in range(X):
        sel = jnp.any(flat_idx == i, axis=-1)
        rank = jnp.cumsum(sel.astype(jnp.int32))
        keep = sel & (rank <= capacity)
        h = jnp.maximum(flat_x @ w1[i] + b1[i, 0], 0.0)
        y = h @ w2[i] + b2[i, 0]
        updates = updates + jnp.where(keep[:, None], y * flat_g[:, i:i + 1], 0.0)
    return updates.reshape(B, T, E), gating, top_idx


if __name__ == "__main__":
    B, T, n_embed, num_experts, top_k = 2, 8, 32, 8, 2
    hidden = 4 * n_embed

    key = jax.random.PRNGKey(0)
    (k_x, k_wr, k_br, k_wn, k_bn, k_w1, k_b1, k_w2, k_b2, k_noise) = jax.random.split(key, 10)

    x = jax.random.normal(k_x, (B, T, n_embed), dtype=jnp.float32)

    # nn.Linear(n_embed, num_experts): weight (out, in) -> pass transposed (in, out)
    bound = 1.0 / (n_embed ** 0.5)
    w_route = jax.random.uniform(k_wr, (n_embed, num_experts), minval=-bound, maxval=bound,
                                 dtype=jnp.float32)
    b_route = jax.random.uniform(k_br, (num_experts,), minval=-bound, maxval=bound,
                                 dtype=jnp.float32)
    w_noise = jax.random.uniform(k_wn, (n_embed, num_experts), minval=-bound, maxval=bound,
                                 dtype=jnp.float32)
    b_noise = jax.random.uniform(k_bn, (num_experts,), minval=-bound, maxval=bound,
                                 dtype=jnp.float32)

    # Stacked ExpertLayer params (nn.Linear weights passed transposed).
    w1 = jax.random.uniform(k_w1, (num_experts, n_embed, hidden), minval=-bound, maxval=bound,
                            dtype=jnp.float32)
    b1 = jax.random.uniform(k_b1, (num_experts, 1, hidden), minval=-bound, maxval=bound,
                            dtype=jnp.float32)
    bound2 = 1.0 / (hidden ** 0.5)
    w2 = jax.random.uniform(k_w2, (num_experts, hidden, n_embed), minval=-bound2, maxval=bound2,
                            dtype=jnp.float32)
    b2 = jax.random.uniform(k_b2, (num_experts, 1, n_embed), minval=-bound2, maxval=bound2,
                            dtype=jnp.float32)

    # torch.randn_like(logits) equivalent, shared with the reference for determinism.
    noise = jax.random.normal(k_noise, (B, T, num_experts), dtype=jnp.float32)

    final, gating, indices = sparse_moe_forward(
        x, w_route, b_route, w_noise, b_noise, w1, b1, w2, b2, noise,
        top_k, capacity_factor=1.0)
    jax.block_until_ready((final, gating, indices))

    ref_final, ref_gating, ref_idx = _reference_sparse_moe(
        x, w_route, b_route, w_noise, b_noise, w1, b1, w2, b2, noise,
        top_k, capacity_factor=1.0)

    assert final.shape == (B, T, n_embed)
    assert gating.shape == (B, T, num_experts)
    assert indices.shape == (B, T, top_k)
    assert jnp.allclose(gating, ref_gating, atol=2e-5, rtol=2e-5)
    assert jnp.all(jnp.sort(indices, axis=-1) == jnp.sort(ref_idx, axis=-1))
    assert jnp.allclose(final, ref_final, atol=1e-4, rtol=1e-4)

    print("KERNEL_OK")
</pallas_src>

<mosaic_0001>
module attributes {stable_mosaic.version = 11 : i64} {
  func.func @_router_kernel(%arg0: i32, %arg1: memref<16x32xf32, #tpu.memory_space<vmem>>, %arg2: memref<32x16xf32, #tpu.memory_space<vmem>>, %arg3: memref<1x16xf32, #tpu.memory_space<vmem>>, %arg4: memref<16x8xf32, #tpu.memory_space<vmem>>, %arg5: memref<16x8xf32, #tpu.memory_space<vmem>>, %arg6: memref<16x2xi32, #tpu.memory_space<vmem>>) attributes {dimension_semantics = [#tpu.dimension_semantics<parallel>], iteration_bounds = array<i64: 1>, scalar_prefetch = 0 : i64, scratch_operands = 0 : i64, tpu.core_type = #tpu.core_type<tc>, window_params = [{transform_indices = @transform_0, window_bounds = array<i64: 16, 32>}, {pipeline_mode = #tpu.pipeline_mode<synchronous>, transform_indices = @transform_1, window_bounds = array<i64: 32, 16>}, {pipeline_mode = #tpu.pipeline_mode<synchronous>, transform_indices = @transform_2, window_bounds = array<i64: 1, 16>}, {transform_indices = @transform_3, window_bounds = array<i64: 16, 8>}, {transform_indices = @transform_4, window_bounds = array<i64: 16, 8>}, {transform_indices = @transform_5, window_bounds = array<i64: 16, 2>}]} {
    %c0 = arith.constant 0 : index
    %c0_0 = arith.constant 0 : index
    %0 = vector.load %arg1[%c0, %c0_0] : memref<16x32xf32, #tpu.memory_space<vmem>>, vector<16x32xf32>
    %c0_1 = arith.constant 0 : index
    %c0_2 = arith.constant 0 : index
    %1 = vector.load %arg2[%c0_1, %c0_2] : memref<32x16xf32, #tpu.memory_space<vmem>>, vector<32x16xf32>
    %cst = arith.constant dense<0.000000e+00> : vector<16x16xf32>
    %2 = tpu.matmul %0, %1, %cst {dimension_numbers = #tpu.dot_dimension_numbers<[1], [0], [0], [1], [0, 0, 1, 1], [], []>} : vector<16x32xf32>, vector<32x16xf32>, vector<16x16xf32> -> vector<16x16xf32>
    %c0_3 = arith.constant 0 : index
    %c0_4 = arith.constant 0 : index
    %3 = vector.load %arg3[%c0_3, %c0_4] : memref<1x16xf32, #tpu.memory_space<vmem>>, vector<1x16xf32>
    %4 = vector.broadcast %3 : vector<1x16xf32> to vector<16x16xf32>
    %5 = arith.addf %2, %4 : vector<16x16xf32>
    %6 = vector.extract_strided_slice %5 {offsets = [0, 0], sizes = [16, 8], strides = [1, 1]} : vector<16x16xf32> to vector<16x8xf32>
    %7 = vector.extract_strided_slice %5 {offsets = [0, 8], sizes = [16, 8], strides = [1, 1]} : vector<16x16xf32> to vector<16x8xf32>
    %cst_5 = arith.constant 0.000000e+00 : f32
    %8 = vector.broadcast %cst_5 : f32 to vector<16x8xf32>
    %9 = arith.maximumf %8, %7 : vector<16x8xf32>
    %10 = vector.broadcast %cst_5 : f32 to vector<16x8xf32>
    %11 = arith.subf %10, %7 : vector<16x8xf32>
    %12 = arith.cmpf one, %11, %11 : vector<16x8xf32>
    %13 = vector.broadcast %cst_5 : f32 to vector<16x8xf32>
    %14 = arith.addf %13, %7 : vector<16x8xf32>
    %15 = math.absf %11 : vector<16x8xf32>
    %cst_6 = arith.constant 0.000000e+00 : f32
    %16 = vector.broadcast %cst_6 : f32 to vector<16x8xf32>
    %17 = arith.subf %16, %15 : vector<16x8xf32>
    %18 = math.exp %17 : vector<16x8xf32>
    %19 = math.log1p %18 : vector<16x8xf32>
    %20 = arith.addf %9, %19 : vector<16x8xf32>
    %21 = arith.select %12, %14, %20 : vector<16x8xi1>, vector<16x8xf32>
    %c0_7 = arith.constant 0 : index
    %c0_8 = arith.constant 0 : index
    %22 = vector.load %arg4[%c0_7, %c0_8] : memref<16x8xf32, #tpu.memory_space<vmem>>, vector<16x8xf32>
    %23 = arith.mulf %22, %21 : vector<16x8xf32>
    %24 = arith.addf %6, %23 : vector<16x8xf32>
    %25 = tpu.iota {dimensions = array<i32: 1>} : vector<16x8xi32>
    %26 = tpu.iota {dimensions = array<i32: 1>} : vector<16x2xi32>
    %cst_9 = arith.constant 0xFF800000 : f32
    %27 = vector.broadcast %cst_9 : f32 to vector<16x8xf32>
    %c0_i32 = arith.constant 0 : i32
    %28 = vector.broadcast %c0_i32 : i32 to vector<16x2xi32>
    %cst_10 = arith.constant dense<0xFF800000> : vector<16xf32>
    %29 = vector.multi_reduction <maximumf>, %24, %cst_10 [1] : vector<16x8xf32> to vector<16xf32>
    %30 = vector.shape_cast %29 : vector<16xf32> to vector<16x1xf32>
    %31 = vector.broadcast %30 : vector<16x1xf32> to vector<16x8xf32>
    %32 = arith.cmpf oeq, %24, %31 : vector<16x8xf32>
    %c8_i32 = arith.constant 8 : i32
    %33 = vector.broadcast %c8_i32 : i32 to vector<16x8xi32>
    %34 = arith.select %32, %25, %33 : vector<16x8xi1>, vector<16x8xi32>
    %cst_11 = arith.constant dense<2147483647> : vector<16xi32>
    %35 = vector.multi_reduction <minsi>, %34, %cst_11 [1] : vector<16x8xi32> to vector<16xi32>
    %36 = vector.shape_cast %35 : vector<16xi32> to vector<16x1xi32>
    %37 = vector.broadcast %36 : vector<16x1xi32> to vector<16x8xi32>
    %38 = arith.cmpi eq, %25, %37 : vector<16x8xi32>
    %39 = arith.select %38, %24, %27 : vector<16x8xi1>, vector<16x8xf32>
    %cst_12 = arith.constant 0xFF800000 : f32
    %40 = vector.broadcast %cst_12 : f32 to vector<16x8xf32>
    %41 = arith.select %38, %40, %24 : vector<16x8xi1>, vector<16x8xf32>
    %c0_i32_13 = arith.constant 0 : i32
    %42 = vector.broadcast %c0_i32_13 : i32 to vector<16x2xi32>
    %43 = arith.cmpi eq, %26, %42 : vector<16x2xi32>
    %44 = vector.shape_cast %36 : vector<16x1xi32> to vector<16x1xi32>
    %45 = vector.broadcast %44 : vector<16x1xi32> to vector<16x2xi32>
    %46 = arith.select %43, %45, %28 : vector<16x2xi1>, vector<16x2xi32>
    %cst_14 = arith.constant dense<0xFF800000> : vector<16xf32>
    %47 = vector.multi_reduction <maximumf>, %41, %cst_14 [1] : vector<16x8xf32> to vector<16xf32>
    %48 = vector.shape_cast %47 : vector<16xf32> to vector<16x1xf32>
    %49 = vector.broadcast %48 : vector<16x1xf32> to vector<16x8xf32>
    %50 = arith.cmpf oeq, %41, %49 : vector<16x8xf32>
    %c8_i32_15 = arith.constant 8 : i32
    %51 = vector.broadcast %c8_i32_15 : i32 to vector<16x8xi32>
    %52 = arith.select %50, %25, %51 : vector<16x8xi1>, vector<16x8xi32>
    %cst_16 = arith.constant dense<2147483647> : vector<16xi32>
    %53 = vector.multi_reduction <minsi>, %52, %cst_16 [1] : vector<16x8xi32> to vector<16xi32>
    %54 = vector.shape_cast %53 : vector<16xi32> to vector<16x1xi32>
    %55 = vector.broadcast %54 : vector<16x1xi32> to vector<16x8xi32>
    %56 = arith.cmpi eq, %25, %55 : vector<16x8xi32>
    %57 = arith.select %56, %24, %39 : vector<16x8xi1>, vector<16x8xf32>
    %c1_i32 = arith.constant 1 : i32
    %58 = vector.broadcast %c1_i32 : i32 to vector<16x2xi32>
    %59 = arith.cmpi eq, %26, %58 : vector<16x2xi32>
    %60 = vector.shape_cast %54 : vector<16x1xi32> to vector<16x1xi32>
    %61 = vector.broadcast %60 : vector<16x1xi32> to vector<16x2xi32>
    %62 = arith.select %59, %61, %46 : vector<16x2xi1>, vector<16x2xi32>
    %cst_17 = arith.constant dense<0xFF800000> : vector<16xf32>
    %63 = vector.multi_reduction <maximumf>, %57, %cst_17 [1] : vector<16x8xf32> to vector<16xf32>
    %64 = vector.shape_cast %63 : vector<16xf32> to vector<16x1xf32>
    %65 = vector.broadcast %64 : vector<16x1xf32> to vector<16x8xf32>
    %66 = arith.subf %57, %65 : vector<16x8xf32>
    %67 = math.exp %66 : vector<16x8xf32>
    %cst_18 = arith.constant dense<0.000000e+00> : vector<16xf32>
    %68 = vector.multi_reduction <add>, %67, %cst_18 [1] : vector<16x8xf32> to vector<16xf32>
    %69 = vector.shape_cast %68 : vector<16xf32> to vector<16x1xf32>
    %70 = tpu.reciprocal %69 : vector<16x1xf32> -> vector<16x1xf32>
    %71 = vector.broadcast %70 : vector<16x1xf32> to vector<16x8xf32>
    %72 = arith.mulf %67, %71 : vector<16x8xf32>
    %c0_19 = arith.constant 0 : index
    %c0_20 = arith.constant 0 : index
    %73 = vector.load %arg5[%c0_19, %c0_20] : memref<16x8xf32, #tpu.memory_space<vmem>>, vector<16x8xf32>
    tpu.vector_store %arg5[%c0_19, %c0_20], %72 {strides = array<i32>} : memref<16x8xf32, #tpu.memory_space<vmem>>, vector<16x8xf32>,
    %c0_21 = arith.constant 0 : index
    %c0_22 = arith.constant 0 : index
    %74 = vector.load %arg6[%c0_21, %c0_22] : memref<16x2xi32, #tpu.memory_space<vmem>>, vector<16x2xi32>
    tpu.vector_store %arg6[%c0_21, %c0_22], %62 {strides = array<i32>} : memref<16x2xi32, #tpu.memory_space<vmem>>, vector<16x2xi32>,
    return
  }
  func.func @transform_0(%arg0: i32) -> (i32, i32) {
    %c0_i32 = arith.constant 0 : i32
    %c0_i32_0 = arith.constant 0 : i32
    return %arg0, %c0_i32 : i32, i32
  }
  func.func @transform_1(%arg0: i32) -> (i32, i32) {
    %c0_i32 = arith.constant 0 : i32
    %c0_i32_0 = arith.constant 0 : i32
    %c0_i32_1 = arith.constant 0 : i32
    return %c0_i32, %c0_i32_0 : i32, i32
  }
  func.func @transform_2(%arg0: i32) -> (i32, i32) {
    %c0_i32 = arith.constant 0 : i32
    %c0_i32_0 = arith.constant 0 : i32
    %c0_i32_1 = arith.constant 0 : i32
    return %c0_i32, %c0_i32_0 : i32, i32
  }
  func.func @transform_3(%arg0: i32) -> (i32, i32) {
    %c0_i32 = arith.constant 0 : i32
    %c0_i32_0 = arith.constant 0 : i32
    return %arg0, %c0_i32 : i32, i32
  }
  func.func @transform_4(%arg0: i32) -> (i32, i32) {
    %c0_i32 = arith.constant 0 : i32
    %c0_i32_0 = arith.constant 0 : i32
    return %arg0, %c0_i32 : i32, i32
  }
  func.func @transform_5(%arg0: i32) -> (i32, i32) {
    %c0_i32 = arith.constant 0 : i32
    %c0_i32_0 = arith.constant 0 : i32
    return %arg0, %c0_i32 : i32, i32
  }
}

</mosaic_0001>

<bundles_post_ra>
// kernel: tpu_custom_call.1
= control target key start
LH: loop header
LB: loop body
LE: loop exit
PB: predicated region body
PF: predicated region fallthrough
CT: control target
= control target key end

     0   :  { %vm32_vm0 = vcmask 261120   ;;  %vm168_vm5 = vcmask 64512   ;;  %v166_v53 = vlaneseq  ;;  %s467_s1 = inlined_call_operand.vmem [shape: f32[32,16], index: 1, kind: input, shape index: {}]   ;;  %s468_s0 = inlined_call_operand.vmem [shape: f32[16,32], index: 0, kind: input, shape index: {}]   ;;  %s469_s2 = inlined_call_operand.vmem [shape: f32[1,16], index: 2, kind: input, shape index: {}]   ;;  %s470_s3 = inlined_call_operand.vmem [shape: f32[16,8], index: 3, kind: input, shape index: {}]   ;;  %s471_s5 = inlined_call_operand.vmem [shape: s32[16,2], index: 5, kind: output, shape index: {1}]   ;;  %s472_s4 = inlined_call_operand.vmem [shape: f32[16,8], index: 4, kind: output, shape index: {0}]  }
   0x1   :  { %v24_v0 = vld [vmem:[%s467_s1 + $0x18] sm:$0xff]  ;;  %v23_v1 = vld [vmem:[%s467_s1 + $0x10] sm:$0xff]  ;;  %v19_v2 = vld [vmem:[%s468_s0] sm:$0xff] }
   0x2   :  { %309 = vmatprep.subr.mxu0 %v24_v0  ;;  %v22_v3 = vld [vmem:[%s467_s1 + $0x8] sm:$0xff]  ;;  %317 = vmatprep.mubr.msk.f32.mxu0 %vm32_vm0, %v19_v2  ;;  %v21_v4 = vld [vmem:[%s467_s1] sm:$0xff]  ;;  %v405_v54 = vand.u32 127, %v166_v53 }
   0x3   :  { %310 = vmatpush3.msra.mxu0 %v24_v0  ;;  %v20_v5 = vld [vmem:[%s468_s0 + $0x8] sm:$0xff]  ;;  %v300_v6 = vld [vmem:[%s469_s2] ss:$0 sm:$0xff]  ;;  %s337_s0 = smov 120  }
   0x4   :  { %311 = vmatprep.subr.mxu0 %v23_v1  ;;  %v152_v43 = vld [vmem:[%s470_s3] sm:$0xff]  ;;  %v153_v46 = vld [vmem:[%s470_s3 + $0x8] sm:$0xff] }
   0x5   :  { %312 = vmatpush3.msra.mxu0 %v23_v1 }
   0x6   :  { %313 = vmatprep.subr.mxu0 %v22_v3 }
   0x7   :  { %314 = vmatpush3.msra.mxu0 %v22_v3 }
   0x8   :  { %315 = vmatprep.subr.mxu0 %v21_v4 }
   0x9   :  { %316 = vmatpush3.msra.mxu0 %v21_v4 }
   0xa   :  { %318 = vmatmul.mubr.msk.f32.vlgmr.msra.gmra.mxu0 %vm32_vm0, %v20_v5  ;;  %vm215_vm0 = vcmp.eq.s32.totalorder %v405_v54, 0 }
  0xca   :  { %v319_v7 = vpop.f32.mrf.mxu0 }
  0xcb   :  { %v111_v8 = vadd.f32 %v319_v7, %v300_v6 }
  0xcc   :  { %v105_v9 = vpop.f32.mrf.mxu0 }
  0xcd   :  { %v106_v10 = vadd.f32 %v300_v6, %v105_v9  ;;  %v117_v11 = vsub.f32 0.0, %v111_v8  ;;  %v115_v39 = vmax.f32 %v111_v8, 0.0 }
  0xcf   :  { %v116_v12 = vsub.f32 0.0, %v106_v10  ;;  %v123_v13 = vand.u32 2147483647, %v117_v11  ;;  %v114_v35 = vmax.f32 %v106_v10, 0.0  ;;  %vm119_vm4 = vcmp.ne.f32.partialorder %v117_v11, %v117_v11 }
  0xd1   :  { %v122_v14 = vand.u32 2147483647, %v116_v12  ;;  %v125_v15 = vsub.f32 0.0, %v123_v13  ;;  %vm118_vm3 = vcmp.ne.f32.partialorder %v116_v12, %v116_v12 }
  0xd3   :  { %v124_v16 = vsub.f32 0.0, %v122_v14  ;;  %v128_v17 = vmul.f32 1.442695, %v125_v15 }
  0xd5   :  { %v126_v18 = vmul.f32 1.442695, %v124_v16  ;;  %321 = vpow2.f32 %v128_v17 }
  0xd7   :  { %323 = vpow2.f32 %v126_v18 }
  0xe2   :  { %v322_v19 = vpop.eup %321 }
  0xe3   :  { %v139_v20 = vadd.f32 1.0, %v322_v19  ;;  %v142_v24 = vmul.f32 -0.5, %v322_v19  ;;  %v145_v29 = vand.u32 2147483647, %v322_v19 }
  0xe4   :  { %v324_v21 = vpop.eup %323 }
  0xe5   :  { %v130_v22 = vadd.f32 1.0, %v324_v21  ;;  %325 = vlog2.f32 %v139_v20  ;;  %v133_v23 = vmul.f32 -0.5, %v324_v21  ;;  %v143_v26 = vadd.f32 1.0, %v142_v24 }
  0xe6   :  { %v136_v28 = vand.u32 2147483647, %v324_v21  ;;  %vm146_vm2 = vcmp.lt.f32.partialorder %v145_v29, 0.0004427343 }
  0xe7   :  { %327 = vlog2.f32 %v130_v22  ;;  %v134_v25 = vadd.f32 1.0, %v133_v23  ;;  %v144_v34 = vmul.f32 %v322_v19, %v143_v26 }
  0xe8   :  { %vm137_vm1 = vcmp.lt.f32.partialorder %v136_v28, 0.0004427343 }
  0xe9   :  { %v135_v33 = vmul.f32 %v324_v21, %v134_v25 }
  0xf2   :  { %v326_v27 = vpop.eup %325 }
  0xf3   :  { %v141_v30 = vmul.f32 0.6931472, %v326_v27 }
  0xf4   :  { %v328_v31 = vpop.eup %327 }
  0xf5   :  { %v132_v32 = vmul.f32 0.6931472, %v328_v31  ;;  %v147_v37 = vsel %vm146_vm2, %v144_v34, %v141_v30  ;;  %vm289_vm2 = vcmask 15360  }
  0xf6   :  { %v149_v41 = vadd.f32 %v147_v37, %v115_v39 }
  0xf7   :  { %v138_v36 = vsel %vm137_vm1, %v135_v33, %v132_v32  ;;  %vm262_vm1 = vcmp.eq.s32.totalorder %v405_v54, 1 }
  0xf8   :  { %v148_v38 = vadd.f32 %v138_v36, %v114_v35  ;;  %v151_v42 = vsel %vm119_vm4, %v111_v8, %v149_v41 }
  0xfa   :  { %v150_v40 = vsel %vm118_vm3, %v106_v10, %v148_v38 }
  0xfb   :  { %156 = vrot.lane.b32.xlu0 %v150_v40, %s337_s0 }
  0xff   :  { %158 = vrot.lane.b32.xlu0 %v151_v42, %s337_s0 }
 0x16d   :  { %v157_v44 = vpop.permute.xlu0 %156 }
 0x16e   :  { %v162_v45 = vmul.f32 %v157_v44, %v152_v43 }
 0x170   :  { %v397_v47 = vadd.f32 %v162_v45, %v106_v10 }
 0x171   :  { %v159_v48 = vpop.permute.xlu0 %158 }
 0x172   :  { %v163_v49 = vmul.f32 %v159_v48, %v153_v46  ;;  %v169_v50 = vsel %vm168_vm5, %v397_v47, -inf }
 0x173   :  { %170 = vmax.xlane.f32.xlu1 %v169_v50 }
 0x174   :  { %v401_v51 = vadd.f32 %v163_v49, %v111_v8 }
 0x176   :  { %v172_v52 = vsel %vm168_vm5, %v401_v51, -inf }
 0x177   :  { %173 = vmax.xlane.f32.xlu1 %v172_v52 }
 0x1fc   :  { %v171_v55 = vpop.xlane.xlu1 %170 }
 0x1fd   :  { %vm175_vm6 = vcmp.eq.f32.partialorder %v397_v47, %v171_v55 }
 0x1fe   :  { %v177_v56 = vsel %vm175_vm6, %v405_v54, 8 }
 0x1ff   :  { %v179_v57 = vsel %vm168_vm5, %v177_v56, 2147483647 }
 0x200   :  { %v174_v58 = vpop.xlane.xlu1 %173  ;;  %v181_v59 = vshra.s32 %v179_v57, 16  ;;  %v180_v1 = vand.u32 65535, %v179_v57 }
 0x201   :  { %vm176_vm7 = vcmp.eq.f32.partialorder %v401_v51, %v174_v58 }
 0x202   :  { %v178_v60 = vsel %vm176_vm7, %v405_v54, 8  ;;  %v183_v61 = vcvt.s32.f32 %v181_v59  ;;  %v182_v3 = vcvt.s32.f32 %v180_v1 }
 0x203   :  { %v194_v62 = vsel %vm168_vm5, %v178_v60, 2147483647 }
 0x204   :  { %184 = vmin.xlane.f32.xlu0 %v183_v61  ;;  %v196_v63 = vshra.s32 %v194_v62, 16  ;;  %v195_v4 = vand.u32 65535, %v194_v62 }
 0x206   :  { %v198_v0 = vcvt.s32.f32 %v196_v63  ;;  %v197_v7 = vcvt.s32.f32 %v195_v4 }
 0x208   :  { %199 = vmin.xlane.f32.xlu1 %v198_v0 }
 0x28d   :  { %v185_v2 = vpop.xlane.xlu0 %184 }
 0x28e   :  { %vm186_vm8 = vcmp.eq.f32.partialorder %v183_v61, %v185_v2  ;;  %v191_v9 = vcvt.f32.s32 %v185_v2 }
 0x28f   :  { %v187_v5 = vsel %vm186_vm8, %v182_v3, inf }
 0x290   :  { %188 = vmin.xlane.f32.xlu1 %v187_v5  ;;  %v192_v11 = vshll.u32 %v191_v9, 16 }
 0x291   :  { %v200_v6 = vpop.xlane.xlu1 %199 }
 0x292   :  { %vm201_vm9 = vcmp.eq.f32.partialorder %v198_v0, %v200_v6  ;;  %v206_v12 = vcvt.f32.s32 %v200_v6 }
 0x293   :  { %v202_v8 = vsel %vm201_vm9, %v197_v7, inf }
 0x294   :  { %203 = vmin.xlane.f32.xlu1 %v202_v8  ;;  %v207_v16 = vshll.u32 %v206_v12, 16 }
 0x319   :  { %v189_v10 = vpop.xlane.xlu1 %188 }
 0x31a   :  { %v190_v13 = vcvt.f32.s32 %v189_v10 }
 0x31c   :  { %v193_v14 = vadd.s32 %v192_v11, %v190_v13 }
 0x31d   :  { %v204_v15 = vpop.xlane.xlu1 %203 }
 0x31e   :  { %v205_v17 = vcvt.f32.s32 %v204_v15  ;;  %vm209_vm10 = vcmp.eq.s32.totalorder %v405_v54, %v193_v14  ;;  %v216_v48 = vsel %vm215_vm0, %v193_v14, 0 }
 0x31f   :  { %v213_v18 = vsel %vm209_vm10, -inf, %v397_v47  ;;  %v211_v49 = vsel %vm209_vm10, %v397_v47, -inf }
 0x320   :  { %v208_v19 = vadd.s32 %v207_v16, %v205_v17  ;;  %v218_v20 = vsel %vm168_vm5, %v213_v18, -inf }
 0x321   :  { %219 = vmax.xlane.f32.xlu1 %v218_v20 }
 0x322   :  { %vm210_vm11 = vcmp.eq.s32.totalorder %v405_v54, %v208_v19  ;;  %v217_v59 = vsel %vm215_vm0, %v208_v19, 0 }
 0x323   :  { %v214_v21 = vsel %vm210_vm11, -inf, %v401_v51  ;;  %v212_v60 = vsel %vm210_vm11, %v401_v51, -inf }
 0x324   :  { %v221_v22 = vsel %vm168_vm5, %v214_v21, -inf }
 0x325   :  { %222 = vmax.xlane.f32.xlu1 %v221_v22 }
 0x3aa   :  { %v220_v23 = vpop.xlane.xlu1 %219 }
 0x3ab   :  { %vm224_vm12 = vcmp.eq.f32.partialorder %v213_v18, %v220_v23 }
 0x3ac   :  { %v226_v24 = vsel %vm224_vm12, %v405_v54, 8 }
 0x3ad   :  { %v228_v25 = vsel %vm168_vm5, %v226_v24, 2147483647 }
 0x3ae   :  { %v223_v26 = vpop.xlane.xlu1 %222  ;;  %v230_v27 = vshra.s32 %v228_v25, 16  ;;  %v229_v33 = vand.u32 65535, %v228_v25 }
 0x3af   :  { %vm225_vm13 = vcmp.eq.f32.partialorder %v214_v21, %v223_v26 }
 0x3b0   :  { %v227_v28 = vsel %vm225_vm13, %v405_v54, 8  ;;  %v232_v29 = vcvt.s32.f32 %v230_v27  ;;  %v231_v35 = vcvt.s32.f32 %v229_v33 }
 0x3b1   :  { %v243_v30 = vsel %vm168_vm5, %v227_v28, 2147483647 }
 0x3b2   :  { %233 = vmin.xlane.f32.xlu1 %v232_v29  ;;  %v245_v31 = vshra.s32 %v243_v30, 16  ;;  %v244_v36 = vand.u32 65535, %v243_v30 }
 0x3b4   :  { %v247_v32 = vcvt.s32.f32 %v245_v31  ;;  %v246_v39 = vcvt.s32.f32 %v244_v36 }
 0x3b6   :  { %248 = vmin.xlane.f32.xlu1 %v247_v32 }
 0x43b   :  { %v234_v34 = vpop.xlane.xlu1 %233 }
 0x43c   :  { %vm235_vm14 = vcmp.eq.f32.partialorder %v232_v29, %v234_v34  ;;  %v240_v41 = vcvt.f32.s32 %v234_v34 }
 0x43d   :  { %v236_v37 = vsel %vm235_vm14, %v231_v35, inf }
 0x43e   :  { %237 = vmin.xlane.f32.xlu1 %v236_v37  ;;  %v241_v43 = vshll.u32 %v240_v41, 16 }
 0x43f   :  { %v249_v38 = vpop.xlane.xlu1 %248 }
 0x440   :  { %vm250_vm15 = vcmp.eq.f32.partialorder %v247_v32, %v249_v38  ;;  %v255_v44 = vcvt.f32.s32 %v249_v38 }
 0x441   :  { %v251_v40 = vsel %vm250_vm15, %v246_v39, inf }
 0x442   :  { %252 = vmin.xlane.f32.xlu0 %v251_v40  ;;  %v256_v52 = vshll.u32 %v255_v44, 16 }
 0x4c7   :  { %v238_v42 = vpop.xlane.xlu1 %237 }
 0x4c8   :  { %v239_v45 = vcvt.f32.s32 %v238_v42 }
 0x4ca   :  { %v242_v46 = vadd.s32 %v241_v43, %v239_v45 }
 0x4cb   :  { %v253_v50 = vpop.xlane.xlu0 %252 }
 0x4cc   :  { %v263_v53 = vsel %vm262_vm1, %v242_v46, %v216_v48  ;;  %v254_v55 = vcvt.f32.s32 %v253_v50  ;;  %vm258_vm3 = vcmp.eq.s32.totalorder %v405_v54, %v242_v46 }
 0x4cd   :  { %290 = vst.msk [vmem:[%s471_s5] sm:$0xff] %vm289_vm2, %v263_v53  ;;  %v260_v56 = vsel %vm258_vm3, %v397_v47, %v211_v49 }
 0x4ce   :  { %v257_v57 = vadd.s32 %v256_v52, %v254_v55  ;;  %v265_v58 = vsel %vm168_vm5, %v260_v56, -inf }
 0x4cf   :  { %266 = vmax.xlane.f32.xlu1 %v265_v58 }
 0x4d0   :  { %v264_v61 = vsel %vm262_vm1, %v257_v57, %v217_v59  ;;  %vm259_vm4 = vcmp.eq.s32.totalorder %v405_v54, %v257_v57 }
 0x4d1   :  { %291 = vst.msk [vmem:[%s471_s5 + $0x8] sm:$0xff] %vm289_vm2, %v264_v61  ;;  %v261_v47 = vsel %vm259_vm4, %v401_v51, %v212_v60 }
 0x4d2   :  { %v268_v62 = vsel %vm168_vm5, %v261_v47, -inf }
 0x4d3   :  { %269 = vmax.xlane.f32.xlu0 %v268_v62 }
 0x558   :  { %v267_v63 = vpop.xlane.xlu1 %266 }
 0x559   :  { %v271_v0 = vsub.f32 %v260_v56, %v267_v63 }
 0x55b   :  { %v273_v1 = vmul.f32 1.442695, %v271_v0 }
 0x55c   :  { %v270_v2 = vpop.xlane.xlu0 %269 }
 0x55d   :  { %329 = vpow2.f32 %v273_v1  ;;  %v272_v3 = vsub.f32 %v261_v47, %v270_v2 }
 0x55f   :  { %v275_v4 = vmul.f32 1.442695, %v272_v3 }
 0x561   :  { %331 = vpow2.f32 %v275_v4 }
 0x56a   :  { %v330_v5 = vpop.eup %329 }
 0x56b   :  { %v277_v54 = vsel %vm168_vm5, %v330_v5, 0.0 }
 0x56c   :  { %278 = vadd.xlane.f32.xlu1 %v277_v54 }
 0x56e   :  { %v332_v6 = vpop.eup %331 }
 0x56f   :  { %v280_v7 = vsel %vm168_vm5, %v332_v6, 0.0 }
 0x570   :  { %281 = vadd.xlane.f32.xlu0 %v280_v7 }
 0x5f5   :  { %v279_v51 = vpop.xlane.xlu1 %278 }
 0x5f6   :  { %333 = vrcp.f32 %v279_v51 }
 0x5f9   :  { %v282_v8 = vpop.xlane.xlu0 %281 }
 0x5fa   :  { %335 = vrcp.f32 %v282_v8 }
 0x603   :  { %v334_v9 = vpop.eup %333 }
 0x604   :  { %v285_v10 = vmul.f32 %v334_v9, %v330_v5 }
 0x606   :  { %287 = vst.msk [vmem:[%s472_s4] sm:$0xff] %vm168_vm5, %v285_v10 }
 0x607   :  { %v336_v11 = vpop.eup %335 }
 0x608   :  { %v286_v12 = vmul.f32 %v336_v11, %v332_v6 }
 0x60a   :  { %288 = vst.msk [vmem:[%s472_s4 + $0x8] sm:$0xff] %vm168_vm5, %v286_v12 }

</bundles_post_ra>
